<compile_context>
chip_gen: v6e
topology: v6e:2x2x1
jax: 0.10.0
libtpu: 0.0.40
codegen_flags: <defaults>
</compile_context>

<pallas_src>
import jax
import jax.numpy as jnp
from jax import lax
from jax.experimental import pallas as pl
from jax.experimental.pallas import tpu as pltpu


def _gradcam_forward_kernel(p_ref, w_ref, w2_ref, b2_ref, feat_ref, pred_ref):
    """All-in-VMEM forward.

    p_ref   : (K_PAD, B*HW_PAD)   im2col patches + ones row, zero-padded (lane-dense)
    w_ref   : (Cout, K_PAD)       conv weights with bias column, zero-padded
    w2_ref  : (Cout, NCLS_PAD)    folded (bottleneck @ head) / HW, zero-padded to 128
    b2_ref  : (1, NCLS_PAD)       folded bias (bb @ wh + bh), zero-padded
    feat_ref: (B, Cout, HW_PAD)   backbone feature map (NCHW-major)  -> output 1
    pred_ref: (B, NCLS_PAD)       row-major padded logits            -> output 2
    """
    B, Cout, HW_PAD = feat_ref.shape

    # (1) Fused im2col conv + bias: a single MXU matmul, lane-dense result.
    conv = jnp.dot(w_ref[...], p_ref[...],
                   preferred_element_type=jnp.float32)            # (Cout, B*HW_PAD)

    # (2) Feature writeback + global sum pool, per image (static unroll).
    #     HW_PAD is a multiple of 128, so each slice is an aligned lane-tile
    #     block and each store is a full-width unmasked vst.  Padded columns of
    #     the patch matrix are all-zero, so they contribute 0 to the sums.
    pooled_cols = []
    for b in range(B):
        fb = conv[:, b * HW_PAD:(b + 1) * HW_PAD]                 # (Cout, HW_PAD)
        feat_ref[b] = fb
        pooled_cols.append(jnp.sum(fb, axis=-1, keepdims=True))   # (Cout, 1)
    pooled_t = jnp.concatenate(pooled_cols, axis=1)               # (Cout, B)

    # (3) Folded bottleneck+head tail: one small matmul, lane-dense (B, NCLS_PAD)
    #     result.  Contract pooled_t on its Cout axis so the output is row-major
    #     without an explicit transpose; the 1/HW scale and both biases are
    #     already baked into w2/b2 in the wrapper.
    pred_ref[...] = lax.dot_general(
        pooled_t, w2_ref[...],
        dimension_numbers=(((0,), (0,)), ((), ())),
        preferred_element_type=jnp.float32) + b2_ref[...]


def _gradcam_forward(images_nchw, params):
    """Forward pass of the GradCAM module: returns (feature [NCHW], prediction)."""
    wc, bc, wb, bb, wh, bh = params
    B, Cin, H, W = images_nchw.shape
    Cout = wc.shape[-1]
    dbot = wb.shape[-1]
    ncls = wh.shape[-1]
    HW = H * W
    HW_PAD = ((HW + 127) // 128) * 128      # lane-aligned per-image feature width
    NCLS_PAD = ((ncls + 127) // 128) * 128  # lane-dense head width (65 -> 128)
    K = 9 * Cin + 1                         # 3x3 taps * Cin channels + bias row
    K_PAD = ((K + 7) // 8) * 8              # whole sublane tiles (28 -> 32)

    # ---- wrapper-side layout prep (fused under jit) ----
    x = images_nchw.astype(jnp.float32)
    xp = jnp.pad(x, ((0, 0), (0, 0), (1, 1), (1, 1)))             # SAME padding
    taps = [xp[:, :, kh:kh + H, kw:kw + W]                        # each (B,Cin,H,W)
            for kh in range(3) for kw in range(3)]
    pat = jnp.stack(taps, axis=0)                                 # (9, B, Cin, H, W)
    pat = jnp.transpose(pat, (0, 2, 1, 3, 4)).reshape(9 * Cin, B, HW)
    pat = jnp.concatenate(                                        # bias row of ones
        [pat, jnp.ones((1, B, HW), jnp.float32)], axis=0)         # (K, B, HW)
    pat = jnp.pad(pat, ((0, K_PAD - K), (0, 0), (0, HW_PAD - HW)))
    pat = pat.reshape(K_PAD, B * HW_PAD)                          # (K_PAD, B*HW_PAD)

    # Conv weights (HWIO) -> (Cout, 9*Cin) with row ordering matching `pat`,
    # bias folded in as a column, zero-padded to K_PAD.
    w_aug = jnp.concatenate(
        [jnp.transpose(wc, (3, 0, 1, 2)).reshape(Cout, 9 * Cin),
         bc.reshape(Cout, 1),
         jnp.zeros((Cout, K_PAD - K), jnp.float32)], axis=1)      # (Cout, K_PAD)

    # Fold bottleneck + head (+ 1/HW pool scaling) into one matrix / bias,
    # zero-padded to NCLS_PAD (padded logits are exact zeros, sliced off below).
    wh_pad = jnp.zeros((dbot, NCLS_PAD), jnp.float32).at[:, :ncls].set(wh)
    bh_pad = jnp.zeros((NCLS_PAD,), jnp.float32).at[:ncls].set(bh)
    w2 = (wb @ wh_pad) * (1.0 / HW)                               # (Cout, NCLS_PAD)
    b2 = (bb @ wh_pad + bh_pad).reshape(1, NCLS_PAD)              # (1, NCLS_PAD)

    cost = pl.CostEstimate(
        flops=2 * Cout * K_PAD * B * HW_PAD + 2 * B * Cout * NCLS_PAD,
        transcendentals=0,
        bytes_accessed=4 * (K_PAD * B * HW_PAD + Cout * K_PAD + Cout * NCLS_PAD
                            + NCLS_PAD + B * Cout * HW_PAD + B * NCLS_PAD))

    vmem = pl.BlockSpec(memory_space=pltpu.MemorySpace.VMEM)
    feat, pred = pl.pallas_call(
        _gradcam_forward_kernel,
        out_shape=(jax.ShapeDtypeStruct((B, Cout, HW_PAD), jnp.float32),
                   jax.ShapeDtypeStruct((B, NCLS_PAD), jnp.float32)),
        in_specs=[vmem] * 4,
        out_specs=(vmem, vmem),
        cost_estimate=cost,
    )(pat, w_aug, w2, b2)

    feature = feat[:, :, :HW].reshape(B, Cout, H, W)   # NCHW-major: no transpose
    prediction = pred[:, :ncls]                        # (B, ncls)
    return feature, prediction


gradcam_forward = jax.jit(_gradcam_forward)


def reference_forward(images_nchw, params):
    """Plain-JAX reference for correctness checking."""
    wc, bc, wb, bb, wh, bh = params
    x = jnp.transpose(images_nchw, (0, 2, 3, 1)).astype(jnp.float32)
    feat = jax.lax.conv_general_dilated(
        x, wc, window_strides=(1, 1), padding='SAME',
        dimension_numbers=('NHWC', 'HWIO', 'NHWC')) + bc
    pooled = feat.mean(axis=(1, 2))
    f = pooled @ wb + bb
    pred = f @ wh + bh
    return jnp.transpose(feat, (0, 3, 1, 2)), pred


def init_params(key, cin=3, cout=32, dbot=32, ncls=65):
    k = jax.random.split(key, 6)
    wc = 0.1 * jax.random.normal(k[0], (3, 3, cin, cout), jnp.float32)
    bc = 0.1 * jax.random.normal(k[1], (cout,), jnp.float32)
    wb = 0.1 * jax.random.normal(k[2], (cout, dbot), jnp.float32)
    bb = 0.1 * jax.random.normal(k[3], (dbot,), jnp.float32)
    wh = 0.1 * jax.random.normal(k[4], (dbot, ncls), jnp.float32)
    bh = 0.1 * jax.random.normal(k[5], (ncls,), jnp.float32)
    return wc, bc, wb, bb, wh, bh


if __name__ == "__main__":
    key = jax.random.PRNGKey(0)
    kimg, kpar = jax.random.split(key)

    B, Cin, H, W = 2, 3, 16, 16
    images = jax.random.normal(kimg, (B, Cin, H, W), jnp.float32)  # NCHW like PyTorch
    params = init_params(kpar)

    feature, prediction = jax.block_until_ready(gradcam_forward(images, params))
    feat_ref, pred_ref = reference_forward(images, params)

    assert feature.shape == (B, 32, H, W)
    assert prediction.shape == (B, 65)
    assert jnp.allclose(feature, feat_ref, atol=1e-4, rtol=1e-4)
    assert jnp.allclose(prediction, pred_ref, atol=1e-4, rtol=1e-4)

    print("KERNEL_OK")
</pallas_src>

<mosaic_0001>
module attributes {stable_mosaic.version = 11 : i64} {
  func.func @_gradcam_forward_kernel(%arg0: memref<32x512xf32, #tpu.memory_space<vmem>>, %arg1: memref<32x32xf32, #tpu.memory_space<vmem>>, %arg2: memref<32x128xf32, #tpu.memory_space<vmem>>, %arg3: memref<1x128xf32, #tpu.memory_space<vmem>>, %arg4: memref<2x32x256xf32, #tpu.memory_space<vmem>>, %arg5: memref<2x128xf32, #tpu.memory_space<vmem>>) attributes {dimension_semantics = [], scalar_prefetch = 0 : i64, scratch_operands = 0 : i64, tpu.core_type = #tpu.core_type<tc>} {
    %c0 = arith.constant 0 : index
    %c0_0 = arith.constant 0 : index
    %0 = vector.load %arg1[%c0, %c0_0] : memref<32x32xf32, #tpu.memory_space<vmem>>, vector<32x32xf32>
    %c0_1 = arith.constant 0 : index
    %c0_2 = arith.constant 0 : index
    %1 = vector.load %arg0[%c0_1, %c0_2] : memref<32x512xf32, #tpu.memory_space<vmem>>, vector<32x512xf32>
    %cst = arith.constant dense<0.000000e+00> : vector<32x512xf32>
    %2 = tpu.matmul %0, %1, %cst {dimension_numbers = #tpu.dot_dimension_numbers<[1], [0], [0], [1], [0, 0, 1, 1], [], []>} : vector<32x32xf32>, vector<32x512xf32>, vector<32x512xf32> -> vector<32x512xf32>
    %3 = vector.extract_strided_slice %2 {offsets = [0, 0], sizes = [32, 256], strides = [1, 1]} : vector<32x512xf32> to vector<32x256xf32>
    %c0_3 = arith.constant 0 : index
    %c0_4 = arith.constant 0 : index
    %c0_5 = arith.constant 0 : index
    %4 = vector.load %arg4[%c0_3, %c0_4, %c0_5] : memref<2x32x256xf32, #tpu.memory_space<vmem>>, vector<1x32x256xf32>
    %5 = vector.shape_cast %4 : vector<1x32x256xf32> to vector<32x256xf32>
    %6 = vector.shape_cast %3 : vector<32x256xf32> to vector<1x32x256xf32>
    tpu.vector_store %arg4[%c0_3, %c0_4, %c0_5], %6 {strides = array<i32>} : memref<2x32x256xf32, #tpu.memory_space<vmem>>, vector<1x32x256xf32>,
    %cst_6 = arith.constant dense<0.000000e+00> : vector<32xf32>
    %7 = vector.multi_reduction <add>, %3, %cst_6 [1] : vector<32x256xf32> to vector<32xf32>
    %8 = vector.shape_cast %7 : vector<32xf32> to vector<32x1xf32>
    %9 = vector.extract_strided_slice %2 {offsets = [0, 256], sizes = [32, 256], strides = [1, 1]} : vector<32x512xf32> to vector<32x256xf32>
    %c1 = arith.constant 1 : index
    %c0_7 = arith.constant 0 : index
    %c0_8 = arith.constant 0 : index
    %10 = vector.load %arg4[%c1, %c0_7, %c0_8] : memref<2x32x256xf32, #tpu.memory_space<vmem>>, vector<1x32x256xf32>
    %11 = vector.shape_cast %10 : vector<1x32x256xf32> to vector<32x256xf32>
    %12 = vector.shape_cast %9 : vector<32x256xf32> to vector<1x32x256xf32>
    tpu.vector_store %arg4[%c1, %c0_7, %c0_8], %12 {strides = array<i32>} : memref<2x32x256xf32, #tpu.memory_space<vmem>>, vector<1x32x256xf32>,
    %cst_9 = arith.constant dense<0.000000e+00> : vector<32xf32>
    %13 = vector.multi_reduction <add>, %9, %cst_9 [1] : vector<32x256xf32> to vector<32xf32>
    %14 = vector.shape_cast %13 : vector<32xf32> to vector<32x1xf32>
    %15 = tpu.concatenate %8, %14 in 1 : vector<32x1xf32>, vector<32x1xf32> -> vector<32x2xf32>
    %c0_10 = arith.constant 0 : index
    %c0_11 = arith.constant 0 : index
    %16 = vector.load %arg2[%c0_10, %c0_11] : memref<32x128xf32, #tpu.memory_space<vmem>>, vector<32x128xf32>
    %cst_12 = arith.constant dense<0.000000e+00> : vector<2x128xf32>
    %17 = tpu.matmul %15, %16, %cst_12 {dimension_numbers = #tpu.dot_dimension_numbers<[0], [0], [1], [1], [0, 1, 1, 1], [], []>} : vector<32x2xf32>, vector<32x128xf32>, vector<2x128xf32> -> vector<2x128xf32>
    %c0_13 = arith.constant 0 : index
    %c0_14 = arith.constant 0 : index
    %18 = vector.load %arg3[%c0_13, %c0_14] : memref<1x128xf32, #tpu.memory_space<vmem>>, vector<1x128xf32>
    %19 = vector.broadcast %18 : vector<1x128xf32> to vector<2x128xf32>
    %20 = arith.addf %17, %19 : vector<2x128xf32>
    %c0_15 = arith.constant 0 : index
    %c0_16 = arith.constant 0 : index
    %21 = vector.load %arg5[%c0_15, %c0_16] : memref<2x128xf32, #tpu.memory_space<vmem>>, vector<2x128xf32>
    tpu.vector_store %arg5[%c0_15, %c0_16], %20 {strides = array<i32>} : memref<2x128xf32, #tpu.memory_space<vmem>>, vector<2x128xf32>,
    return
  }
}

</mosaic_0001>

<bundles_post_ra>
// kernel: _gradcam_forward.1
= control target key start
LH: loop header
LB: loop body
LE: loop exit
PB: predicated region body
PF: predicated region fallthrough
CT: control target
= control target key end

     0   :  { %v471_v6 = vmov 0.0   ;;  %vm40_vm0 = vcmask 261120   ;;  %s652_s0 = inlined_call_operand.vmem [shape: f32[32,512], index: 0, kind: input, shape index: {}]   ;;  %s653_s1 = inlined_call_operand.vmem [shape: f32[32,32], index: 1, kind: input, shape index: {}]   ;;  %s654_s2 = inlined_call_operand.vmem [shape: f32[32,128], index: 2, kind: input, shape index: {}]   ;;  %s655_s3 = inlined_call_operand.vmem [shape: f32[1,128], index: 3, kind: input, shape index: {}]   ;;  %s656_s4 = inlined_call_operand.vmem [shape: f32[2,32,256], index: 4, kind: output, shape index: {0}]   ;;  %s657_s5 = inlined_call_operand.hbm [shape: f32[2,128], index: 5, kind: output, shape index: {1}]  }
   0x1   :  { %v37_v0 = vld [vmem:[%s652_s0 + $0x68] sm:$0xff]  ;;  %v36_v1 = vld [vmem:[%s652_s0 + $0x60] sm:$0xff]  ;;  %v39_v3 = vld [vmem:[%s652_s0 + $0x78] sm:$0xff]  ;;  %117 = vmatprep.mubr.f32.mxu0 %v471_v6 }
   0x2   :  { %v33_v2 = vld [vmem:[%s652_s0 + $0x48] sm:$0xff]  ;;  %77 = vmatprep.subr.mxu0 %v37_v0  ;;  %v32_v4 = vld [vmem:[%s652_s0 + $0x40] sm:$0xff]  ;;  %v38_v5 = vld [vmem:[%s652_s0 + $0x70] sm:$0xff]  ;;  %166 = vmatprep.subr.mxu1 %v39_v3 }
   0x3   :  { %78 = vmatpush1.msra.mxu0 %v36_v1  ;;  %v29_v7 = vld [vmem:[%s652_s0 + $0x28] sm:$0xff]  ;;  %v35_v8 = vld [vmem:[%s652_s0 + $0x58] sm:$0xff]  ;;  %167 = vmatpush1.msra.mxu1 %v38_v5  ;;  %v28_v9 = vld [vmem:[%s652_s0 + $0x20] sm:$0xff] }
   0x4   :  { %79 = vmatprep.subr.mxu0 %v33_v2  ;;  %v34_v10 = vld [vmem:[%s652_s0 + $0x50] sm:$0xff]  ;;  %v31_v11 = vld [vmem:[%s652_s0 + $0x38] sm:$0xff]  ;;  %168 = vmatprep.subr.mxu1 %v35_v8  ;;  %v25_v12 = vld [vmem:[%s652_s0 + $0x8] sm:$0xff] }
   0x5   :  { %80 = vmatpush1.msra.mxu0 %v32_v4  ;;  %v30_v13 = vld [vmem:[%s652_s0 + $0x30] sm:$0xff]  ;;  %169 = vmatpush1.msra.mxu1 %v34_v10  ;;  %v24_v14 = vld [vmem:[%s652_s0] sm:$0xff]  ;;  %v27_v15 = vld [vmem:[%s652_s0 + $0x18] sm:$0xff] }
   0x6   :  { %81 = vmatprep.subr.mxu0 %v29_v7  ;;  %170 = vmatprep.subr.mxu1 %v31_v11  ;;  %v20_v16 = vld [vmem:[%s653_s1] sm:$0xff]  ;;  %v26_v17 = vld [vmem:[%s652_s0 + $0x10] sm:$0xff] }
   0x7   :  { %82 = vmatpush1.msra.mxu0 %v28_v9 }
   0x8   :  { %11 = vsyncpa [#allocation3], 0  ;;  %83 = vmatprep.subr.mxu0 %v25_v12  ;;  %171 = vmatpush1.msra.mxu1 %v30_v13  ;;  %v21_v18 = vld [vmem:[%s653_s1 + $0x8] sm:$0xff]  ;;  %v22_v19 = vld [vmem:[%s653_s1 + $0x10] sm:$0xff]  ;;  %vm472_vm1 = vmmov 0   ;;  %vm272_vm2 = vcmask 7168  }
   0x9   :  { %84 = vmatpush1.msra.mxu0 %v24_v14  ;;  %172 = vmatprep.subr.mxu1 %v27_v15  ;;  %v23_v20 = vld [vmem:[%s653_s1 + $0x18] sm:$0xff]  ;;  %v279_v46 = vld [vmem:[%s654_s2 + $0x10] sm:$0xff]  ;;  %v278_v47 = vld [vmem:[%s654_s2 + $0x8] sm:$0xff]  ;;  %s473_s19 = smov [#allocation2]  }
   0xa   :  { %412 = vmatmul.mubr.msk.f32.vlgmr.msra.gmra.mxu0 %vm40_vm0, %v20_v16  ;;  %173 = vmatpush1.msra.mxu1 %v26_v17  ;;  %v280_v45 = vld [vmem:[%s654_s2 + $0x18] sm:$0xff]  ;;  %v277_v48 = vld [vmem:[%s654_s2] sm:$0xff]  ;;  %s402_s20 = sshll.u32 %s473_s19, 4  ;;  %s403_s20 = int_to_ptr.vmem [resolvable:$true] %s402_s20 }
   0xb   :  { %206 = vmatprep.mubr.f32.mxu1 %v471_v6  ;;  %123 = vmatprep.mubr.f32.mxu0 %v471_v6  ;;  %v428_v62 = vld [vmem:[%s655_s3] ss:$0 sm:$0xff]  ;;  %s449_s21 = scalar_lea.vmem %s403_s20, 32  ;;  %p454_p1 = scmp.lt.s32.totalorder %s403_s20, %s403_s20 }
   0xc   :  { %416 = vmatmul.mubr.msk.f32.vlgmr.msra.gmra.mxu1 %vm40_vm0, %v20_v16  ;;  %435 = vmatprep.subr.mxu0 %v471_v6  ;;  %p450_p0 = scmp.ne.s32.totalorder %s403_s20, %s449_s21  ;;  %p455_p2 = scmp.lt.s32.totalorder %s449_s21, %s449_s21 }
   0xd   :  { %212 = vmatprep.mubr.f32.mxu1 %v471_v6  ;;  %436 = vmatpush3.msra.mxu0 %v280_v45 }
   0xe   :  { %413 = vmatmul.mubr.msk.f32.gmra.mxu0 %vm40_vm0, %v21_v18  ;;  %437 = vmatprep.subr.mxu0 %v471_v6  ;;  %p456_p3 = por %p455_p2, %p454_p1 }
   0xf   :  { %129 = vmatprep.mubr.f32.mxu0 %v471_v6  ;;  %438 = vmatpush3.msra.mxu0 %v279_v46 }
  0x10   :  { %417 = vmatmul.mubr.msk.f32.gmra.mxu1 %vm40_vm0, %v21_v18  ;;  %439 = vmatprep.subr.mxu0 %v471_v6  ;;  %p457_p4 = pnand %p456_p3, %p450_p0 }
  0x11   :  { %218 = vmatprep.mubr.f32.mxu1 %v471_v6  ;;  %440 = vmatpush3.msra.mxu0 %v278_v47 }
  0x12   :  { %414 = vmatmul.mubr.msk.f32.gmra.mxu0 %vm40_vm0, %v22_v19  ;;  %441 = vmatprep.subr.mxu0 %v471_v6 }
  0x13   :  { %135 = vmatprep.mubr.f32.mxu0 %v471_v6  ;;  %442 = vmatpush3.msra.mxu0 %v277_v48 }
  0x14   :  { %418 = vmatmul.mubr.msk.f32.gmra.mxu1 %vm40_vm0, %v22_v19 }
  0x15   :  { %224 = vmatprep.mubr.f32.mxu1 %v471_v6 }
  0x16   :  { %415 = vmatmul.mubr.msk.f32.gmra.mxu0 %vm40_vm0, %v23_v20 }
  0x17   :  { %443 = vmatprep.mubr.msk.f32.mxu0 %vm472_vm1, %v471_v6 }
  0x18   :  { %419 = vmatmul.mubr.msk.f32.gmra.mxu1 %vm40_vm0, %v23_v20 }
  0xca   :  { %v119_v21 = vpop.f32.mrf.mxu0 }
  0xcb   :  { %231 = vst [vmem:[%s656_s4] sm:$0xff] %v119_v21 }
  0xcc   :  { %v121_v22 = vpop.f32.mrf.mxu0  ;;  %v208_v23 = vpop.f32.mrf.mxu1 }
  0xcd   :  { %232 = vst [vmem:[%s656_s4 + $0x8] sm:$0xff] %v121_v22  ;;  %420 = vst [vmem:[%s656_s4 + $0x40] sm:$0xff] %v208_v23  ;;  %v239_v24 = vadd.f32 %v121_v22, %v119_v21 }
  0xce   :  { %v125_v25 = vpop.f32.mrf.mxu0  ;;  %v210_v26 = vpop.f32.mrf.mxu1 }
  0xcf   :  { %233 = vst [vmem:[%s656_s4 + $0x10] sm:$0xff] %v125_v25  ;;  %421 = vst [vmem:[%s656_s4 + $0x48] sm:$0xff] %v210_v26  ;;  %240 = vadd.xlane.f32.xlu0 %v239_v24  ;;  %v260_v29 = vadd.f32 %v210_v26, %v208_v23 }
  0xd0   :  { %v127_v27 = vpop.f32.mrf.mxu0  ;;  %v214_v28 = vpop.f32.mrf.mxu1 }
  0xd1   :  { %234 = vst [vmem:[%s656_s4 + $0x18] sm:$0xff] %v127_v27  ;;  %422 = vst [vmem:[%s656_s4 + $0x50] sm:$0xff] %v214_v28  ;;  %v242_v30 = vadd.f32 %v127_v27, %v125_v25 }
  0xd2   :  { %v216_v31 = vpop.f32.mrf.mxu1  ;;  %v131_v32 = vpop.f32.mrf.mxu0 }
  0xd3   :  { %423 = vst [vmem:[%s656_s4 + $0x58] sm:$0xff] %v216_v31  ;;  %261 = vadd.xlane.f32.xlu0 %v260_v29  ;;  %243 = vadd.xlane.f32.xlu1 %v242_v30  ;;  %235 = vst [vmem:[%s656_s4 + $0x20] sm:$0xff] %v131_v32  ;;  %v263_v35 = vadd.f32 %v216_v31, %v214_v28 }
  0xd4   :  { %v220_v33 = vpop.f32.mrf.mxu1  ;;  %v133_v34 = vpop.f32.mrf.mxu0 }
  0xd5   :  { %424 = vst [vmem:[%s656_s4 + $0x60] sm:$0xff] %v220_v33  ;;  %236 = vst [vmem:[%s656_s4 + $0x28] sm:$0xff] %v133_v34  ;;  %v245_v36 = vadd.f32 %v133_v34, %v131_v32 }
  0xd6   :  { %v222_v37 = vpop.f32.mrf.mxu1  ;;  %v137_v38 = vpop.f32.mrf.mxu0 }
  0xd7   :  { %425 = vst [vmem:[%s656_s4 + $0x68] sm:$0xff] %v222_v37  ;;  %264 = vadd.xlane.f32.xlu1 %v263_v35  ;;  %237 = vst [vmem:[%s656_s4 + $0x30] sm:$0xff] %v137_v38  ;;  %246 = vadd.xlane.f32.xlu0 %v245_v36  ;;  %v266_v41 = vadd.f32 %v222_v37, %v220_v33 }
  0xd8   :  { %v226_v39 = vpop.f32.mrf.mxu1  ;;  %v139_v40 = vpop.f32.mrf.mxu0 }
  0xd9   :  { %426 = vst [vmem:[%s656_s4 + $0x70] sm:$0xff] %v226_v39  ;;  %238 = vst [vmem:[%s656_s4 + $0x38] sm:$0xff] %v139_v40  ;;  %v248_v42 = vadd.f32 %v139_v40, %v137_v38 }
  0xda   :  { %v228_v43 = vpop.f32.mrf.mxu1 }
  0xdb   :  { %427 = vst [vmem:[%s656_s4 + $0x78] sm:$0xff] %v228_v43  ;;  %267 = vadd.xlane.f32.xlu1 %v266_v41  ;;  %249 = vadd.xlane.f32.xlu0 %v248_v42  ;;  %v269_v44 = vadd.f32 %v228_v43, %v226_v39 }
  0xdf   :  { %270 = vadd.xlane.f32.xlu1 %v269_v44 }
 0x158   :  { %v241_v49 = vpop.xlane.xlu0 %240 }
 0x15c   :  { %v262_v50 = vpop.xlane.xlu0 %261  ;;  %v244_v51 = vpop.xlane.xlu1 %243 }
 0x15d   :  { %v273_v52 = vsel %vm272_vm2, %v241_v49, %v262_v50 }
 0x15e   :  { %288 = vxpose.xlu0.b32.start [1/4] (short) (narrow) %v273_v52, 8 }
 0x160   :  { %v265_v53 = vpop.xlane.xlu1 %264  ;;  %v247_v55 = vpop.xlane.xlu0 %246 }
 0x161   :  { %v274_v54 = vsel %vm272_vm2, %v244_v51, %v265_v53 }
 0x162   :  { %289 = vxpose.xlu0.b32.cont [2/4] (short) (narrow) %v274_v54, 8 }
 0x164   :  { %v268_v56 = vpop.xlane.xlu1 %267  ;;  %v250_v58 = vpop.xlane.xlu0 %249 }
 0x165   :  { %v275_v57 = vsel %vm272_vm2, %v247_v55, %v268_v56 }
 0x166   :  { %290 = vxpose.xlu0.b32.cont [3/4] (short) (narrow) %v275_v57, 8 }
 0x168   :  { %v271_v59 = vpop.xlane.xlu1 %270 }
 0x169   :  { %v276_v60 = vsel %vm272_vm2, %v250_v58, %v271_v59 }
 0x16a   :  { %291 = vxpose.xlu0.b32.end [4/4] (short) (narrow) %v276_v60, 8 }
 0x1da   :  { %v304_v61 = vpop.trf.xlu0 }
 0x1db   :  { %444 = vmatmul.mubr.msk.f32.vlgmr.msra.gmra.mxu0 %vm40_vm0, %v304_v61 }
 0x29b   :  { %v389_v63 = vpop.f32.mrf.mxu0 }
 0x29c   :  { %v390_v0 = vadd.f32 %v428_v62, %v389_v63 }
 0x29d   :  { %v445_v1 = vpop.f32.mrf.mxu0 }
 0x29e   :  { %393 = vst [vmem:[#allocation2] sm:$0x3] %v390_v0 }
 0x29f   :  { %460 = shalt.err (!%p457_p4)
}
 0x2a0   :  { %405 = dma.vmem_to_hbm [thread:$0]  %s403_s20, 32, %s657_s5, [#allocation3]  }
 0x2a1   :  { %469 = dma.done.wait [#allocation3], 32  }
 0x2a2   :  { %470 = vsyncadd [#allocation3], 4294967264 }
 0x2a3   :  { %411 = vsyncpa [#allocation3], 1 }

</bundles_post_ra>
